<compile_context>
chip_gen: v6e
topology: v6e:2x2x1
jax: 0.10.0
libtpu: 0.0.40
codegen_flags: <defaults>
</compile_context>

<pallas_src>
import jax
import jax.numpy as jnp
from jax import lax
from jax.experimental import pallas as pl
from jax.experimental.pallas import tpu as pltpu


def _round_up(x, m):
    return ((x + m - 1) // m) * m


# ----------------------------------------------------------------------------
# Kernel 1: fused conv-as-matmul + bias + BatchNorm(batch stats) + ReLU
#   patches: (R, Kp)  bf16,  weight: (Kp, Cp) bf16,  bias/gamma/beta: (1,Cp) f32
#   out    : (R, Cp)  bf16
# BN uses per-column batch mean / biased variance over the R = N*Ho*Wo rows,
# i.e. exactly PyTorch training-mode BatchNorm2d.  Stats & normalize in f32.
# ----------------------------------------------------------------------------
def conv_mm_bn_relu_kernel(p_ref, w_ref, b_ref, g_ref, bt_ref, o_ref):
    y = jnp.dot(p_ref[...], w_ref[...], preferred_element_type=jnp.float32)
    y = y + b_ref[...]
    mean = jnp.mean(y, axis=0, keepdims=True)
    yc = y - mean
    var = jnp.mean(yc * yc, axis=0, keepdims=True)      # biased, centered
    yn = yc * lax.rsqrt(var + 1e-5)
    o_ref[...] = jnp.maximum(yn * g_ref[...] + bt_ref[...], 0.0).astype(o_ref.dtype)


def _im2col(x_nhwc, kh, kw):
    """x: (N, H, W, C) -> patches (N*Ho*Wo, kh*kw*C), valid convolution."""
    n, h, w, c = x_nhwc.shape
    ho, wo = h - kh + 1, w - kw + 1
    cols = []
    for dy in range(kh):
        for dx in range(kw):
            cols.append(x_nhwc[:, dy:dy + ho, dx:dx + wo, :].reshape(n * ho * wo, c))
    return jnp.concatenate(cols, axis=1), (n, ho, wo)


def fused_conv_bn_relu(x_nhwc, w_pad, b_pad, g_pad, beta_pad):
    """One pallas_call for both branches (channel-fused, block-diag weight).

    Returns the full padded-channel NHWC output (padded channels stay zero:
    zero weight column -> zero activation -> BN(0)=0 -> ReLU(0)=0)."""
    patches, (n, ho, wo) = _im2col(x_nhwc, 3, 3)
    kpad = w_pad.shape[0]
    k = patches.shape[1]
    if kpad > k:
        patches = jnp.pad(patches, ((0, 0), (0, kpad - k)))
    cp = w_pad.shape[1]
    out = pl.pallas_call(
        conv_mm_bn_relu_kernel,
        out_shape=jax.ShapeDtypeStruct((n * ho * wo, cp), jnp.bfloat16),
    )(patches, w_pad, b_pad, g_pad, beta_pad)
    return out.reshape(n, ho, wo, cp)


# ----------------------------------------------------------------------------
# Kernel 2: hidden1  —  K-tiled, N-parallel dense with an int8 weight stream.
#   x_flat : (M, 9216) bf16        wq    : (9216, 3072) int8
#   x_meta : (M, 128)  bf16        wm    : (128, 3072)  bf16
#   scale  : (1, 3072) f32 (per output column, folded in at finalize)
#   bias   : (1, 3072) f32
#   out    : (M, 3072) f32 (resident accumulator across the K grid axis)
# ----------------------------------------------------------------------------
H1_SUBK = 768   # in-kernel dequant chunk: bounds the bf16 temp to ~2.3 MB


def h1_kernel(xf_ref, wq_ref, xm_ref, wm_ref, s_ref, b_ref, o_ref):
    k = pl.program_id(1)

    @pl.when(k == 0)
    def _init():
        o_ref[...] = jnp.zeros_like(o_ref)

    tk, tn = wq_ref.shape
    m = xf_ref.shape[0]

    def body(c, acc):
        off = pl.multiple_of(c * H1_SUBK, H1_SUBK)
        w = wq_ref[pl.ds(off, H1_SUBK), :].astype(jnp.bfloat16)   # dequant chunk
        x = xf_ref[:, pl.ds(off, H1_SUBK)]
        return acc + jnp.dot(x, w, preferred_element_type=jnp.float32)

    acc = lax.fori_loop(0, tk // H1_SUBK, body, jnp.zeros((m, tn), jnp.float32))
    o_ref[...] += acc

    @pl.when(k == pl.num_programs(1) - 1)
    def _finish():
        meta = jnp.dot(xm_ref[...], wm_ref[...],
                       preferred_element_type=jnp.float32)
        # per-column dequant scale applied once to the full accumulator.
        o_ref[...] = jnp.maximum(o_ref[...] * s_ref[...] + meta + b_ref[...], 0.0)


def h1_dense(x_flat, x_meta, w_q, w_meta, scale, b1, *, tk=3072, tn=1536):
    m, kf = x_flat.shape            # (2, 9216) bf16
    npad = w_q.shape[1]             # 3072
    assert kf % tk == 0 and npad % tn == 0 and tk % H1_SUBK == 0, (kf, npad, tk, tn)
    nk = kf // tk                   # 3  (>=2 so each core keeps double-buffering)
    nn = npad // tn                 # 2  (one N block per v7x TensorCore)
    return pl.pallas_call(
        h1_kernel,
        out_shape=jax.ShapeDtypeStruct((m, npad), jnp.float32),
        grid_spec=pltpu.PrefetchScalarGridSpec(
            num_scalar_prefetch=0,
            grid=(nn, nk),
            in_specs=[
                pl.BlockSpec((m, tk), lambda n, k: (0, k)),      # x_flat tile
                pl.BlockSpec((tk, tn), lambda n, k: (k, n)),     # int8 weight tile
                pl.BlockSpec((m, 128), lambda n, k: (0, 0)),     # x_meta (full)
                pl.BlockSpec((128, tn), lambda n, k: (0, n)),    # meta weight slab
                pl.BlockSpec((1, tn), lambda n, k: (0, n)),      # per-col scale
                pl.BlockSpec((1, tn), lambda n, k: (0, n)),      # bias slab
            ],
            out_specs=pl.BlockSpec((m, tn), lambda n, k: (0, n)),
        ),
        compiler_params=pltpu.CompilerParams(
            dimension_semantics=("parallel", "arbitrary"),
            # int8 tiles: 2 x 4.5 MB double-buffered + small temps; 48 MB gives
            # headroom on v5e/v6e and stays under v7x's 64 MiB physical VMEM.
            vmem_limit_bytes=48 * 1024 * 1024,
        ),
    )(x_flat, w_q, x_meta, w_meta, scale, b1)


# ----------------------------------------------------------------------------
# Kernel 3: fused hidden2 (+ReLU) and out layer — single small pallas_call.
# ----------------------------------------------------------------------------
def head_tail_kernel(x_ref, w2_ref, b2_ref, w3_ref, b3_ref, o_ref):
    y = jnp.dot(x_ref[...].astype(jnp.bfloat16), w2_ref[...],
                preferred_element_type=jnp.float32)
    y = jnp.maximum(y + b2_ref[...], 0.0)
    o_ref[...] = jnp.dot(y, w3_ref[...],
                         preferred_element_type=jnp.float32) + b3_ref[...]


def head_tail(x, w2, b2, w3, b3):
    m = x.shape[0]
    return pl.pallas_call(
        head_tail_kernel,
        out_shape=jax.ShapeDtypeStruct((m, w3.shape[1]), jnp.float32),
    )(x, w2, b2, w3, b3)


# ----------------------------------------------------------------------------
# Parameter construction: logical PyTorch-shaped weights are generated, then
# re-laid-out once (branch fusion, lane padding, bf16 cast, int8 quant).
# ----------------------------------------------------------------------------
def init_params(key, in_channels, meta_dim, spatial):
    ks = jax.random.split(key, 8)
    ho2 = spatial - 4                    # after two 3x3 valid convs
    flat = 32 * ho2 * ho2                # per-branch flatten size
    latent_dim = 2 * flat + 2 * meta_dim

    def conv_w(k, cin, cout):
        scale = 1.0 / jnp.sqrt(3.0 * 3.0 * cin)
        return jax.random.normal(k, (3, 3, cin, cout), jnp.float32) * scale

    def lin_w(k, cin, cout):
        scale = 1.0 / jnp.sqrt(float(cin))
        return jax.random.normal(k, (cin, cout), jnp.float32) * scale

    # ---- logical parameters (PyTorch layout) ----
    wb1 = conv_w(ks[0], in_channels, 52)
    wa1 = conv_w(ks[1], in_channels, 52)
    wb2 = conv_w(ks[2], 52, 32)
    wa2 = conv_w(ks[3], 52, 32)
    w1 = lin_w(ks[4], latent_dim, 3000)
    b1 = jnp.zeros((3000,), jnp.float32)
    w2 = lin_w(ks[5], 3000, 100)
    b2 = jnp.zeros((100,), jnp.float32)
    w3 = lin_w(ks[6], 100, 1)
    b3 = jnp.zeros((1,), jnp.float32)

    def fuse_vec(vb, va, pad_to, pad_val):
        v = jnp.concatenate([vb, va])
        v = jnp.pad(v, (0, pad_to - v.shape[0]), constant_values=pad_val)
        return v.reshape(1, pad_to).astype(jnp.float32)

    # ---- fused conv1: input channels [board | action], Cout = 52 + 52 -> 128 --
    cin2 = 2 * in_channels
    co1, co1p = 104, 128
    k1 = 9 * cin2
    k1p = _round_up(k1, 128)
    w1f = jnp.zeros((3, 3, cin2, co1), jnp.float32)
    w1f = w1f.at[:, :, :in_channels, :52].set(wb1)
    w1f = w1f.at[:, :, in_channels:, 52:].set(wa1)
    w1f = jnp.pad(w1f.reshape(k1, co1),
                  ((0, k1p - k1), (0, co1p - co1))).astype(jnp.bfloat16)
    c1_b = fuse_vec(jnp.zeros((52,)), jnp.zeros((52,)), co1p, 0.0)
    c1_g = fuse_vec(jnp.ones((52,)), jnp.ones((52,)), co1p, 1.0)
    c1_beta = fuse_vec(jnp.zeros((52,)), jnp.zeros((52,)), co1p, 0.0)

    # ---- fused conv2: built directly against conv1's padded 128-channel output
    #      (channels 0..51 board, 52..103 action, 104..127 zero) -> K = 1152,
    #      already a multiple of 128, so no K padding and no inter-layer slice.
    co2, co2p = 64, 128
    k2 = 9 * co1p
    w2f = jnp.zeros((3, 3, co1p, co2), jnp.float32)
    w2f = w2f.at[:, :, :52, :32].set(wb2)
    w2f = w2f.at[:, :, 52:104, 32:].set(wa2)
    w2f = jnp.pad(w2f.reshape(k2, co2),
                  ((0, 0), (0, co2p - co2))).astype(jnp.bfloat16)
    c2_b = fuse_vec(jnp.zeros((32,)), jnp.zeros((32,)), co2p, 0.0)
    c2_g = fuse_vec(jnp.ones((32,)), jnp.ones((32,)), co2p, 1.0)
    c2_beta = fuse_vec(jnp.zeros((32,)), jnp.zeros((32,)), co2p, 0.0)

    # ---- hidden1: split rows into flat / meta parts, pad N to 3072,
    #      int8-quantize the big flat part with per-output-column scales. ----
    # logical latent row order: [board_flat, board_meta, action_flat, action_meta]
    n1p = _round_up(3000, 128)           # 3072
    wf = jnp.concatenate([w1[:flat],
                          w1[flat + meta_dim:flat + meta_dim + flat]], axis=0)
    wm = jnp.concatenate([w1[flat:flat + meta_dim],
                          w1[flat + meta_dim + flat:]], axis=0)
    absmax = jnp.max(jnp.abs(wf), axis=0, keepdims=True)          # (1, 3000)
    h1_scale = jnp.maximum(absmax, 1e-8) / 127.0
    wf_q = jnp.clip(jnp.round(wf / h1_scale), -127, 127).astype(jnp.int8)
    wf_q = jnp.pad(wf_q, ((0, 0), (0, n1p - 3000)))               # (9216, 3072)
    h1_scale = jnp.pad(h1_scale, ((0, 0), (0, n1p - 3000)),
                       constant_values=1.0).astype(jnp.float32)   # (1, 3072)
    wm = jnp.pad(wm, ((0, 128 - 2 * meta_dim),
                      (0, n1p - 3000))).astype(jnp.bfloat16)      # (128, 3072)
    b1p = jnp.pad(b1, (0, n1p - 3000)).reshape(1, n1p)

    # ---- hidden2 / out: lane-pad to 128; hidden2 weight in bf16 (f32 acc) ----
    n2p = 128
    w2p = jnp.pad(w2, ((0, n1p - 3000), (0, n2p - 100))).astype(jnp.bfloat16)
    b2p = jnp.pad(b2, (0, n2p - 100)).reshape(1, n2p)
    w3p = jnp.pad(w3, ((0, n2p - 100), (0, 128 - 1)))
    b3p = jnp.pad(b3, (0, 128 - 1)).reshape(1, 128)

    return {
        "c1_w": w1f, "c1_b": c1_b, "c1_g": c1_g, "c1_beta": c1_beta,
        "c2_w": w2f, "c2_b": c2_b, "c2_g": c2_g, "c2_beta": c2_beta,
        "h1_wq": wf_q, "h1_scale": h1_scale, "h1_wm": wm, "h1_b": b1p,
        "h2_w": w2p, "h2_b": b2p,
        "out_w": w3p, "out_b": b3p,
    }


# ----------------------------------------------------------------------------
# Critic forward pass
# ----------------------------------------------------------------------------
def critic_forward(params, state_board, state_meta, action_board, action_meta):
    # inputs are NCHW (PyTorch convention); convert to NHWC and channel-concat
    # the two branches so each conv layer is a single fused pallas_call.
    sb = jnp.transpose(state_board, (0, 2, 3, 1))
    ab = jnp.transpose(action_board, (0, 2, 3, 1))
    x = jnp.concatenate([sb, ab], axis=-1).astype(jnp.bfloat16)   # (N,H,W,2*Cin)

    x = fused_conv_bn_relu(x, params["c1_w"], params["c1_b"],
                           params["c1_g"], params["c1_beta"])     # (N,14,14,128)
    x = fused_conv_bn_relu(x, params["c2_w"], params["c2_b"],
                           params["c2_g"], params["c2_beta"])     # (N,12,12,128)

    # match PyTorch flatten(start_dim=1) on NCHW per branch (channels 32..63
    # hold the action branch; 64..127 are zero padding).
    n = x.shape[0]
    board_flat = jnp.transpose(x[..., :32], (0, 3, 1, 2)).reshape(n, -1)
    action_flat = jnp.transpose(x[..., 32:64], (0, 3, 1, 2)).reshape(n, -1)

    x_flat = jnp.concatenate([board_flat, action_flat], axis=1)   # (N,9216) bf16
    x_meta = jnp.concatenate([state_meta, action_meta], axis=1)
    x_meta = jnp.pad(x_meta, ((0, 0), (0, 128 - x_meta.shape[1]))).astype(jnp.bfloat16)

    h1 = h1_dense(x_flat, x_meta, params["h1_wq"], params["h1_wm"],
                  params["h1_scale"], params["h1_b"])
    q = head_tail(h1, params["h2_w"], params["h2_b"],
                  params["out_w"], params["out_b"])
    return q[:, 0]                                                # (batch,)


if __name__ == "__main__":
    batch, channels, spatial, meta_dim = 2, 4, 16, 8

    key = jax.random.PRNGKey(0)
    k_sb, k_sm, k_ab, k_am, k_par = jax.random.split(key, 5)

    state_board = jax.random.normal(k_sb, (batch, channels, spatial, spatial), jnp.float32)
    state_meta = jax.random.normal(k_sm, (batch, meta_dim), jnp.float32)
    action_board = jax.random.normal(k_ab, (batch, channels, spatial, spatial), jnp.float32)
    action_meta = jax.random.normal(k_am, (batch, meta_dim), jnp.float32)

    params = init_params(k_par, channels, meta_dim, spatial)

    q = critic_forward(params, state_board, state_meta, action_board, action_meta)
    q = jax.block_until_ready(q)

    assert q.shape == (batch,), q.shape
    assert bool(jnp.all(jnp.isfinite(q)))
    print("KERNEL_OK")
</pallas_src>

<mosaic_0001>
module attributes {stable_mosaic.version = 11 : i64} {
  func.func @conv_mm_bn_relu_kernel(%arg0: memref<392x128xbf16, #tpu.memory_space<vmem>>, %arg1: memref<128x128xbf16, #tpu.memory_space<vmem>>, %arg2: memref<1x128xf32, #tpu.memory_space<vmem>>, %arg3: memref<1x128xf32, #tpu.memory_space<vmem>>, %arg4: memref<1x128xf32, #tpu.memory_space<vmem>>, %arg5: memref<392x128xbf16, #tpu.memory_space<vmem>>) attributes {dimension_semantics = [], scalar_prefetch = 0 : i64, scratch_operands = 0 : i64, tpu.core_type = #tpu.core_type<tc>} {
    %c0 = arith.constant 0 : index
    %c0_0 = arith.constant 0 : index
    %0 = vector.load %arg0[%c0, %c0_0] : memref<392x128xbf16, #tpu.memory_space<vmem>>, vector<392x128xbf16>
    %c0_1 = arith.constant 0 : index
    %c0_2 = arith.constant 0 : index
    %1 = vector.load %arg1[%c0_1, %c0_2] : memref<128x128xbf16, #tpu.memory_space<vmem>>, vector<128x128xbf16>
    %cst = arith.constant dense<0.000000e+00> : vector<392x128xf32>
    %2 = tpu.matmul %0, %1, %cst {dimension_numbers = #tpu.dot_dimension_numbers<[1], [0], [0], [1], [0, 0, 1, 1], [], []>} : vector<392x128xbf16>, vector<128x128xbf16>, vector<392x128xf32> -> vector<392x128xf32>
    %c0_3 = arith.constant 0 : index
    %c0_4 = arith.constant 0 : index
    %3 = vector.load %arg2[%c0_3, %c0_4] : memref<1x128xf32, #tpu.memory_space<vmem>>, vector<1x128xf32>
    %4 = vector.broadcast %3 : vector<1x128xf32> to vector<392x128xf32>
    %5 = arith.addf %2, %4 : vector<392x128xf32>
    %cst_5 = arith.constant dense<0.000000e+00> : vector<128xf32>
    %6 = vector.multi_reduction <add>, %5, %cst_5 [0] : vector<392x128xf32> to vector<128xf32>
    %7 = vector.shape_cast %6 : vector<128xf32> to vector<1x128xf32>
    %cst_6 = arith.constant 3.920000e+02 : f32
    %8 = vector.broadcast %cst_6 : f32 to vector<1x128xf32>
    %9 = arith.divf %7, %8 : vector<1x128xf32>
    %10 = vector.broadcast %9 : vector<1x128xf32> to vector<392x128xf32>
    %11 = arith.subf %5, %10 : vector<392x128xf32>
    %12 = arith.mulf %11, %11 : vector<392x128xf32>
    %cst_7 = arith.constant dense<0.000000e+00> : vector<128xf32>
    %13 = vector.multi_reduction <add>, %12, %cst_7 [0] : vector<392x128xf32> to vector<128xf32>
    %14 = vector.shape_cast %13 : vector<128xf32> to vector<1x128xf32>
    %cst_8 = arith.constant 3.920000e+02 : f32
    %15 = vector.broadcast %cst_8 : f32 to vector<1x128xf32>
    %16 = arith.divf %14, %15 : vector<1x128xf32>
    %cst_9 = arith.constant 9.99999974E-6 : f32
    %17 = vector.broadcast %cst_9 : f32 to vector<1x128xf32>
    %18 = arith.addf %16, %17 : vector<1x128xf32>
    %19 = math.rsqrt %18 : vector<1x128xf32>
    %20 = vector.broadcast %19 : vector<1x128xf32> to vector<392x128xf32>
    %21 = arith.mulf %11, %20 : vector<392x128xf32>
    %c0_10 = arith.constant 0 : index
    %c0_11 = arith.constant 0 : index
    %22 = vector.load %arg3[%c0_10, %c0_11] : memref<1x128xf32, #tpu.memory_space<vmem>>, vector<1x128xf32>
    %23 = vector.broadcast %22 : vector<1x128xf32> to vector<392x128xf32>
    %24 = arith.mulf %21, %23 : vector<392x128xf32>
    %c0_12 = arith.constant 0 : index
    %c0_13 = arith.constant 0 : index
    %25 = vector.load %arg4[%c0_12, %c0_13] : memref<1x128xf32, #tpu.memory_space<vmem>>, vector<1x128xf32>
    %26 = vector.broadcast %25 : vector<1x128xf32> to vector<392x128xf32>
    %27 = arith.addf %24, %26 : vector<392x128xf32>
    %cst_14 = arith.constant 0.000000e+00 : f32
    %28 = vector.broadcast %cst_14 : f32 to vector<392x128xf32>
    %29 = arith.maximumf %27, %28 : vector<392x128xf32>
    %30 = arith.truncf %29 : vector<392x128xf32> to vector<392x128xbf16>
    %c0_15 = arith.constant 0 : index
    %c0_16 = arith.constant 0 : index
    %31 = vector.load %arg5[%c0_15, %c0_16] : memref<392x128xbf16, #tpu.memory_space<vmem>>, vector<392x128xbf16>
    tpu.vector_store %arg5[%c0_15, %c0_16], %30 {strides = array<i32>} : memref<392x128xbf16, #tpu.memory_space<vmem>>, vector<392x128xbf16>,
    return
  }
}

</mosaic_0001>

<bundles_post_ra>
// kernel: tpu_custom_call.1
= control target key start
LH: loop header
LB: loop body
LE: loop exit
PB: predicated region body
PF: predicated region fallthrough
CT: control target
= control target key end

     0   :  { %10 = vsyncpa [#allocation3], 0  ;;  %s2685_s0 = inlined_call_operand.hbm [shape: bf16[392,128], index: 0, kind: input, shape index: {}]   ;;  %s2686_s1 = inlined_call_operand.hbm [shape: bf16[128,128], index: 1, kind: input, shape index: {}]   ;;  %s2687_s2 = inlined_call_operand.vmem [shape: f32[1,128], index: 2, kind: input, shape index: {}]   ;;  %s2688_s3 = inlined_call_operand.vmem [shape: f32[1,128], index: 3, kind: input, shape index: {}]   ;;  %s2689_s4 = inlined_call_operand.vmem [shape: f32[1,128], index: 4, kind: input, shape index: {}]   ;;  %s2690_s5 = inlined_call_operand.hbm [shape: bf16[392,128], index: 5, kind: output, shape index: {}]  }
   0x1   :  { %11 = vsyncpa [#allocation6], 0 }
   0x2   :  { %12 = vsyncpa [#allocation4], 0  ;;  %s1785_s18 = smov [#allocation2]  }
   0x3   :  { %s18_s19 = sshll.u32 %s1785_s18, 4  ;;  %s19_s19 = int_to_ptr.vmem [resolvable:$true] %s18_s19 }
   0x4   :  { %s1727_s20 = scalar_lea.vmem %s19_s19, 3136  ;;  %p1732_p1 = scmp.lt.s32.totalorder %s19_s19, %s19_s19 }
   0x5   :  { %p1728_p0 = scmp.ne.s32.totalorder %s19_s19, %s1727_s20  ;;  %p1733_p2 = scmp.lt.s32.totalorder %s1727_s20, %s1727_s20 }
   0x7   :  { %p1734_p3 = por %p1733_p2, %p1732_p1 }
   0x9   :  { %p1735_p4 = pnand %p1734_p3, %p1728_p0 }
   0xb   :  { %1738 = shalt.err (!%p1735_p4)
}
   0xc   :  { %s1786_s21 = smov 64   ;;  %s1787_s22 = smov 4  }
   0xd   :  { %24 = dma.hbm_to_vmem [thread:$0]  %s2685_s0, 3136, %s19_s19, [#allocation3], %s1786_s21, %s1786_s21, %s1787_s22  }
   0xe   :  { %s1788_s25 = smov [#allocation5]  }
   0xf   :  { %s30_s26 = sshll.u32 %s1788_s25, 4  ;;  %s31_s26 = int_to_ptr.vmem [resolvable:$true] %s30_s26 }
  0x10   :  { %s1747_s27 = scalar_lea.vmem %s31_s26, 1024  ;;  %p1752_p6 = scmp.lt.s32.totalorder %s31_s26, %s31_s26 }
  0x11   :  { %p1748_p5 = scmp.ne.s32.totalorder %s31_s26, %s1747_s27  ;;  %p1753_p7 = scmp.lt.s32.totalorder %s1747_s27, %s1747_s27 }
  0x13   :  { %p1754_p8 = por %p1753_p7, %p1752_p6 }
  0x15   :  { %p1755_p9 = pnand %p1754_p8, %p1748_p5 }
  0x17   :  { %1758 = shalt.err (!%p1755_p9)
}
  0x18   :  { %36 = dma.hbm_to_vmem [thread:$0]  %s2686_s1, 1024, %s31_s26, [#allocation6], %s1786_s21, %s1786_s21, %s1787_s22  }
  0x19   :  { %1779 = dma.done.wait [#allocation3], 3136  }
  0x1a   :  { %1780 = vsyncadd [#allocation3], 4294964160 }
  0x1b   :  { %1781 = dma.done.wait [#allocation6], 1024  }
  0x1c   :  { %1782 = vsyncadd [#allocation6], 4294966272  ;;  %v1789_v0 = vmov 0.0   ;;  %vm1790_vm0 = vmmov 0   ;;  %v1684_v1 = vld [vmem:[#allocation5 + $0x38] sm:$0xff]   ;;  %v1685_v2 = vld [vmem:[#allocation5 + $0x30] sm:$0xff]  }
  0x1d   :  { %1545 = vmatprep.subr.bf16.mxu0 %v1789_v0  ;;  %1561 = vmatprep.mubr.msk.bf16.mxu0 %vm1790_vm0, %v1789_v0  ;;  %v1686_v3 = vld [vmem:[#allocation5 + $0x28] sm:$0xff]   ;;  %v1687_v4 = vld [vmem:[#allocation5 + $0x20] sm:$0xff]   ;;  %v1688_v5 = vld [vmem:[#allocation5 + $0x18] sm:$0xff]  }
  0x1e   :  { %1661 = vmatprep.subr.bf16.mxu1 %v1789_v0  ;;  %1613 = vmatprep.mubr.msk.bf16.mxu1 %vm1790_vm0, %v1789_v0  ;;  %v1689_v6 = vld [vmem:[#allocation5 + $0x10] sm:$0xff]   ;;  %v1690_v7 = vld [vmem:[#allocation5 + $0x8] sm:$0xff]   ;;  %v1691_v8 = vld [vmem:[#allocation5] sm:$0xff]  }
  0x1f   :  { %1546 = vmatpush3.bf16.msra.mxu0 %v1684_v1  ;;  %1669 = vmatpush3.bf16.msra.mxu1 %v1684_v1  ;;  %v1692_v9 = vld [vmem:[#allocation2] sm:$0xff]   ;;  %v1699_v10 = vld [vmem:[#allocation2 + $0x68] sm:$0xff]   ;;  %v1701_v12 = vld [vmem:[#allocation2 + $0x70] sm:$0xff]  }
  0x20   :  { %1547 = vmatprep.subr.bf16.mxu0 %v1789_v0  ;;  %1662 = vmatprep.subr.bf16.mxu1 %v1789_v0  ;;  %v1693_v11 = vld [vmem:[#allocation2 + $0x8] sm:$0xff]   ;;  %v1694_v13 = vld [vmem:[#allocation2 + $0x10] sm:$0xff]   ;;  %v1703_v14 = vld [vmem:[#allocation2 + $0x78] sm:$0xff]  }
  0x21   :  { %v1695_v15 = vld [vmem:[#allocation2 + $0x18] sm:$0xff]   ;;  %v1705_v16 = vld [vmem:[#allocation2 + $0x80] sm:$0xff]   ;;  %v1707_v18 = vld [vmem:[#allocation2 + $0x88] sm:$0xff]  }
  0x22   :  { %v1696_v17 = vld [vmem:[#allocation2 + $0x20] sm:$0xff]   ;;  %v1697_v19 = vld [vmem:[#allocation2 + $0x28] sm:$0xff]   ;;  %v1709_v20 = vld [vmem:[#allocation2 + $0x90] sm:$0xff]  }
  0x23   :  { %1548 = vmatpush3.bf16.msra.mxu0 %v1685_v2  ;;  %1670 = vmatpush3.bf16.msra.mxu1 %v1685_v2  ;;  %v1698_v21 = vld [vmem:[#allocation2 + $0x30] sm:$0xff]   ;;  %v1711_v22 = vld [vmem:[#allocation2 + $0x98] sm:$0xff]   ;;  %v1712_v24 = vld [vmem:[#allocation2 + $0xa0] sm:$0xff]  }
  0x24   :  { %1549 = vmatprep.subr.bf16.mxu0 %v1789_v0  ;;  %1663 = vmatprep.subr.bf16.mxu1 %v1789_v0  ;;  %v1700_v23 = vld [vmem:[#allocation2 + $0x38] sm:$0xff]   ;;  %v1702_v25 = vld [vmem:[#allocation2 + $0x40] sm:$0xff]   ;;  %v1713_v26 = vld [vmem:[#allocation2 + $0xa8] sm:$0xff]  }
  0x25   :  { %v1704_v27 = vld [vmem:[#allocation2 + $0x48] sm:$0xff]   ;;  %v1714_v28 = vld [vmem:[#allocation2 + $0xb0] sm:$0xff]   ;;  %v1715_v30 = vld [vmem:[#allocation2 + $0xb8] sm:$0xff]  }
  0x26   :  { %v1706_v29 = vld [vmem:[#allocation2 + $0x50] sm:$0xff]   ;;  %v1708_v31 = vld [vmem:[#allocation2 + $0x58] sm:$0xff]   ;;  %v1716_v32 = vld [vmem:[#allocation2 + $0xc0] ss:$0 sps:$4 sm:$0xff]  }
  0x27   :  { %1550 = vmatpush3.bf16.msra.mxu0 %v1686_v3  ;;  %1671 = vmatpush3.bf16.msra.mxu1 %v1686_v3  ;;  %v1710_v33 = vld [vmem:[#allocation2 + $0x60] sm:$0xff]  }
  0x28   :  { %1551 = vmatprep.subr.bf16.mxu0 %v1789_v0  ;;  %1664 = vmatprep.subr.bf16.mxu1 %v1789_v0 }
  0x2b   :  { %1552 = vmatpush3.bf16.msra.mxu0 %v1687_v4  ;;  %1672 = vmatpush3.bf16.msra.mxu1 %v1687_v4 }
  0x2c   :  { %1553 = vmatprep.subr.bf16.mxu0 %v1789_v0  ;;  %1665 = vmatprep.subr.bf16.mxu1 %v1789_v0 }
  0x2f   :  { %1554 = vmatpush3.bf16.msra.mxu0 %v1688_v5  ;;  %1673 = vmatpush3.bf16.msra.mxu1 %v1688_v5 }
  0x30   :  { %1555 = vmatprep.subr.bf16.mxu0 %v1789_v0  ;;  %1666 = vmatprep.subr.bf16.mxu1 %v1789_v0 }
  0x33   :  { %1556 = vmatpush3.bf16.msra.mxu0 %v1689_v6  ;;  %1674 = vmatpush3.bf16.msra.mxu1 %v1689_v6 }
  0x34   :  { %1557 = vmatprep.subr.bf16.mxu0 %v1789_v0  ;;  %1667 = vmatprep.subr.bf16.mxu1 %v1789_v0 }
  0x37   :  { %1558 = vmatpush3.bf16.msra.mxu0 %v1690_v7  ;;  %1675 = vmatpush3.bf16.msra.mxu1 %v1690_v7 }
  0x38   :  { %1559 = vmatprep.subr.bf16.mxu0 %v1789_v0  ;;  %1668 = vmatprep.subr.bf16.mxu1 %v1789_v0 }
  0x3b   :  { %1560 = vmatpush3.bf16.msra.mxu0 %v1691_v8  ;;  %1676 = vmatpush3.bf16.msra.mxu1 %v1691_v8 }
  0x3e   :  { %1562 = vmatmul.mubr.bf16.vlgmr.msra.gmra.mxu0 %v1692_v9  ;;  %1614 = vmatmul.mubr.bf16.vlgmr.msra.gmra.mxu1 %v1699_v10 }
  0x3f   :  { %1565 = vmatprep.mubr.msk.bf16.mxu0 %vm1790_vm0, %v1789_v0  ;;  %1617 = vmatprep.mubr.msk.bf16.mxu1 %vm1790_vm0, %v1789_v0 }
  0x46   :  { %1566 = vmatmul.mubr.bf16.gmra.mxu0 %v1693_v11  ;;  %1618 = vmatmul.mubr.bf16.gmra.mxu1 %v1701_v12 }
  0x47   :  { %1569 = vmatprep.mubr.msk.bf16.mxu0 %vm1790_vm0, %v1789_v0  ;;  %1621 = vmatprep.mubr.msk.bf16.mxu1 %vm1790_vm0, %v1789_v0 }
  0x4e   :  { %1570 = vmatmul.mubr.bf16.gmra.mxu0 %v1694_v13  ;;  %1622 = vmatmul.mubr.bf16.gmra.mxu1 %v1703_v14 }
  0x4f   :  { %1573 = vmatprep.mubr.msk.bf16.mxu0 %vm1790_vm0, %v1789_v0  ;;  %1625 = vmatprep.mubr.msk.bf16.mxu1 %vm1790_vm0, %v1789_v0 }
  0x56   :  { %1574 = vmatmul.mubr.bf16.gmra.mxu0 %v1695_v15  ;;  %1626 = vmatmul.mubr.bf16.gmra.mxu1 %v1705_v16 }
  0x57   :  { %1577 = vmatprep.mubr.msk.bf16.mxu0 %vm1790_vm0, %v1789_v0  ;;  %1629 = vmatprep.mubr.msk.bf16.mxu1 %vm1790_vm0, %v1789_v0 }
  0x5e   :  { %1578 = vmatmul.mubr.bf16.gmra.mxu0 %v1696_v17  ;;  %1630 = vmatmul.mubr.bf16.gmra.mxu1 %v1707_v18 }
  0x5f   :  { %1581 = vmatprep.mubr.msk.bf16.mxu0 %vm1790_vm0, %v1789_v0  ;;  %1633 = vmatprep.mubr.msk.bf16.mxu1 %vm1790_vm0, %v1789_v0 }
  0x66   :  { %1582 = vmatmul.mubr.bf16.gmra.mxu0 %v1697_v19  ;;  %1634 = vmatmul.mubr.bf16.gmra.mxu1 %v1709_v20  ;;  %v1929_v20 = vld [vmem:[%s2687_s2] ss:$0 sm:$0xff] }
  0x67   :  { %1585 = vmatprep.mubr.msk.bf16.mxu0 %vm1790_vm0, %v1789_v0  ;;  %1637 = vmatprep.mubr.msk.bf16.mxu1 %vm1790_vm0, %v1789_v0 }
  0x6e   :  { %1586 = vmatmul.mubr.bf16.gmra.mxu0 %v1698_v21  ;;  %1638 = vmatmul.mubr.bf16.gmra.mxu1 %v1711_v22 }
  0x6f   :  { %1589 = vmatprep.mubr.msk.bf16.mxu0 %vm1790_vm0, %v1789_v0  ;;  %1641 = vmatprep.mubr.msk.bf16.mxu1 %vm1790_vm0, %v1789_v0 }
  0x76   :  { %1590 = vmatmul.mubr.bf16.gmra.mxu0 %v1700_v23  ;;  %1642 = vmatmul.mubr.bf16.gmra.mxu1 %v1712_v24 }
  0x77   :  { %1593 = vmatprep.mubr.msk.bf16.mxu0 %vm1790_vm0, %v1789_v0  ;;  %1645 = vmatprep.mubr.msk.bf16.mxu1 %vm1790_vm0, %v1789_v0 }
  0x7e   :  { %1594 = vmatmul.mubr.bf16.gmra.mxu0 %v1702_v25  ;;  %1646 = vmatmul.mubr.bf16.gmra.mxu1 %v1713_v26 }
  0x7f   :  { %1597 = vmatprep.mubr.msk.bf16.mxu0 %vm1790_vm0, %v1789_v0  ;;  %1649 = vmatprep.mubr.msk.bf16.mxu1 %vm1790_vm0, %v1789_v0 }
  0x86   :  { %1598 = vmatmul.mubr.bf16.gmra.mxu0 %v1704_v27  ;;  %1650 = vmatmul.mubr.bf16.gmra.mxu1 %v1714_v28 }
  0x87   :  { %1601 = vmatprep.mubr.msk.bf16.mxu0 %vm1790_vm0, %v1789_v0  ;;  %1653 = vmatprep.mubr.msk.bf16.mxu1 %vm1790_vm0, %v1789_v0 }
  0x8e   :  { %1602 = vmatmul.mubr.bf16.gmra.mxu0 %v1706_v29  ;;  %1654 = vmatmul.mubr.bf16.gmra.mxu1 %v1715_v30 }
  0x8f   :  { %1605 = vmatprep.mubr.msk.bf16.mxu0 %vm1790_vm0, %v1789_v0  ;;  %1657 = vmatprep.mubr.msk.bf16.mxu1 %vm1790_vm0, %v1789_v0 }
  0x96   :  { %1606 = vmatmul.mubr.bf16.gmra.mxu0 %v1708_v31  ;;  %1658 = vmatmul.mubr.bf16.gmra.mxu1 %v1716_v32 }
  0x97   :  { %1609 = vmatprep.mubr.msk.bf16.mxu0 %vm1790_vm0, %v1789_v0 }
  0x9e   :  { %1610 = vmatmul.mubr.bf16.gmra.mxu0 %v1710_v33 }
  0xfe   :  { %v352_v34 = vpop.f32.mrf.mxu0  ;;  %v1900_v35 = vpop.f32.mrf.mxu1 }
  0xff   :  { %v1937_v26 = vadd.f32 %v1929_v20, %v352_v34 }
 0x100   :  { %v1563_v36 = vpop.f32.mrf.mxu0  ;;  %v1615_v37 = vpop.f32.mrf.mxu1 }
 0x102   :  { %v355_v38 = vpop.f32.mrf.mxu0  ;;  %v1902_v39 = vpop.f32.mrf.mxu1 }
 0x103   :  { %v1932_v23 = vadd.f32 %v1929_v20, %v355_v38 }
 0x104   :  { %v1564_v40 = vpop.f32.mrf.mxu0  ;;  %v1616_v41 = vpop.f32.mrf.mxu1 }
 0x105   :  { %v550_v30 = vadd.f32 %v1932_v23, %v1937_v26 }
 0x106   :  { %v360_v42 = vpop.f32.mrf.mxu0  ;;  %v1904_v43 = vpop.f32.mrf.mxu1 }
 0x107   :  { %v1940_v27 = vadd.f32 %v1929_v20, %v360_v42 }
 0x108   :  { %v1567_v44 = vpop.f32.mrf.mxu0  ;;  %v1619_v45 = vpop.f32.mrf.mxu1 }
 0x109   :  { %v551_v36 = vadd.f32 %v550_v30, %v1940_v27 }
 0x10a   :  { %v363_v46 = vpop.f32.mrf.mxu0  ;;  %v1906_v47 = vpop.f32.mrf.mxu1 }
 0x10b   :  { %v1945_v31 = vadd.f32 %v1929_v20, %v363_v46 }
 0x10c   :  { %v1568_v48 = vpop.f32.mrf.mxu0  ;;  %v1620_v49 = vpop.f32.mrf.mxu1 }
 0x10d   :  { %v552_v40 = vadd.f32 %v551_v36, %v1945_v31 }
 0x10e   :  { %v368_v50 = vpop.f32.mrf.mxu0  ;;  %v1908_v51 = vpop.f32.mrf.mxu1 }
 0x10f   :  { %v1951_v37 = vadd.f32 %v1929_v20, %v368_v50 }
 0x110   :  { %v1571_v52 = vpop.f32.mrf.mxu0  ;;  %v1623_v53 = vpop.f32.mrf.mxu1 }
 0x111   :  { %v553_v45 = vadd.f32 %v552_v40, %v1951_v37 }
 0x112   :  { %v371_v54 = vpop.f32.mrf.mxu0  ;;  %v1910_v55 = vpop.f32.mrf.mxu1 }
 0x113   :  { %v1955_v41 = vadd.f32 %v1929_v20, %v371_v54 }
 0x114   :  { %v1572_v56 = vpop.f32.mrf.mxu0  ;;  %v1624_v57 = vpop.f32.mrf.mxu1 }
 0x115   :  { %v554_v50 = vadd.f32 %v553_v45, %v1955_v41 }
 0x116   :  { %v376_v58 = vpop.f32.mrf.mxu0  ;;  %v1912_v59 = vpop.f32.mrf.mxu1 }
 0x117   :  { %v1961_v46 = vadd.f32 %v1929_v20, %v376_v58 }
 0x118   :  { %v1575_v60 = vpop.f32.mrf.mxu0  ;;  %v1627_v61 = vpop.f32.mrf.mxu1 }
 0x119   :  { %v555_v54 = vadd.f32 %v554_v50, %v1961_v46 }
 0x11a   :  { %v379_v62 = vpop.f32.mrf.mxu0  ;;  %v1914_v63 = vpop.f32.mrf.mxu1 }
 0x11b   :  { %v1965_v52 = vadd.f32 %v1929_v20, %v379_v62 }
 0x11c   :  { %v1576_v0 = vpop.f32.mrf.mxu0  ;;  %v1628_v1 = vpop.f32.mrf.mxu1 }
 0x11d   :  { %v556_v58 = vadd.f32 %v555_v54, %v1965_v52 }
 0x11e   :  { %v384_v2 = vpop.f32.mrf.mxu0  ;;  %v1916_v3 = vpop.f32.mrf.mxu1 }
 0x11f   :  { %v1971_v57 = vadd.f32 %v1929_v20, %v384_v2 }
 0x120   :  { %v1579_v4 = vpop.f32.mrf.mxu0  ;;  %v1631_v5 = vpop.f32.mrf.mxu1 }
 0x121   :  { %v557_v62 = vadd.f32 %v556_v58, %v1971_v57 }
 0x122   :  { %v387_v6 = vpop.f32.mrf.mxu0  ;;  %v1918_v7 = vpop.f32.mrf.mxu1 }
 0x123   :  { %v1975_v0 = vadd.f32 %v1929_v20, %v387_v6 }
 0x124   :  { %v1580_v8 = vpop.f32.mrf.mxu0  ;;  %v1632_v9 = vpop.f32.mrf.mxu1 }
 0x125   :  { %v558_v2 = vadd.f32 %v557_v62, %v1975_v0 }
 0x126   :  { %v392_v10 = vpop.f32.mrf.mxu0  ;;  %v1920_v11 = vpop.f32.mrf.mxu1 }
 0x127   :  { %v1981_v5 = vadd.f32 %v1929_v20, %v392_v10 }
 0x128   :  { %v1583_v12 = vpop.f32.mrf.mxu0  ;;  %v1635_v13 = vpop.f32.mrf.mxu1 }
 0x129   :  { %v559_v6 = vadd.f32 %v558_v2, %v1981_v5 }
 0x12a   :  { %v395_v14 = vpop.f32.mrf.mxu0  ;;  %v1922_v15 = vpop.f32.mrf.mxu1 }
 0x12b   :  { %v1985_v12 = vadd.f32 %v1929_v20, %v395_v14 }
 0x12c   :  { %v1584_v16 = vpop.f32.mrf.mxu0  ;;  %v1636_v17 = vpop.f32.mrf.mxu1 }
 0x12d   :  { %v560_v10 = vadd.f32 %v559_v6, %v1985_v12 }
 0x12e   :  { %v400_v18 = vpop.f32.mrf.mxu0  ;;  %v1924_v19 = vpop.f32.mrf.mxu1 }
 0x12f   :  { %v1991_v17 = vadd.f32 %v1929_v20, %v400_v18 }
 0x130   :  { %v1587_v21 = vpop.f32.mrf.mxu0  ;;  %v1639_v22 = vpop.f32.mrf.mxu1 }
 0x131   :  { %v561_v14 = vadd.f32 %v560_v10, %v1991_v17 }
 0x132   :  { %v403_v24 = vpop.f32.mrf.mxu0  ;;  %v1934_v25 = vpop.f32.mrf.mxu1 }
 0x134   :  { %v1588_v28 = vpop.f32.mrf.mxu0  ;;  %v1640_v29 = vpop.f32.mrf.mxu1 }
 0x135   :  { %v1995_v28 = vadd.f32 %v1929_v20, %v403_v24 }
 0x136   :  { %v408_v32 = vpop.f32.mrf.mxu0  ;;  %v1947_v33 = vpop.f32.mrf.mxu1 }
 0x137   :  { %v2001_v36 = vadd.f32 %v1929_v20, %v408_v32  ;;  %v562_v18 = vadd.f32 %v561_v14, %v1995_v28 }
 0x138   :  { %v1591_v34 = vpop.f32.mrf.mxu0  ;;  %v1643_v38 = vpop.f32.mrf.mxu1 }
 0x139   :  { %v563_v24 = vadd.f32 %v562_v18, %v2001_v36 }
 0x13a   :  { %v411_v42 = vpop.f32.mrf.mxu0  ;;  %v1957_v44 = vpop.f32.mrf.mxu1 }
 0x13b   :  { %v2005_v40 = vadd.f32 %v1929_v20, %v411_v42 }
 0x13c   :  { %v1592_v48 = vpop.f32.mrf.mxu0  ;;  %v1644_v49 = vpop.f32.mrf.mxu1 }
 0x13d   :  { %v564_v32 = vadd.f32 %v563_v24, %v2005_v40 }
 0x13e   :  { %v416_v53 = vpop.f32.mrf.mxu0  ;;  %v1967_v56 = vpop.f32.mrf.mxu1 }
 0x13f   :  { %v2011_v49 = vadd.f32 %v1929_v20, %v416_v53 }
 0x140   :  { %v1595_v60 = vpop.f32.mrf.mxu0  ;;  %v1647_v61 = vpop.f32.mrf.mxu1 }
 0x141   :  { %v565_v42 = vadd.f32 %v564_v32, %v2011_v49 }
 0x142   :  { %v419_v1 = vpop.f32.mrf.mxu0  ;;  %v1977_v4 = vpop.f32.mrf.mxu1 }
 0x143   :  { %v2015_v60 = vadd.f32 %v1929_v20, %v419_v1 }
 0x144   :  { %v1596_v8 = vpop.f32.mrf.mxu0  ;;  %v1648_v9 = vpop.f32.mrf.mxu1 }
 0x145   :  { %v566_v53 = vadd.f32 %v565_v42, %v2015_v60 }
 0x146   :  { %v424_v13 = vpop.f32.mrf.mxu0  ;;  %v1987_v16 = vpop.f32.mrf.mxu1 }
 0x147   :  { %v2021_v62 = vadd.f32 %v1929_v20, %v424_v13 }
 0x148   :  { %v1599_v21 = vpop.f32.mrf.mxu0  ;;  %v1651_v22 = vpop.f32.mrf.mxu1 }
 0x149   :  { %v567_v1 = vadd.f32 %v566_v53, %v2021_v62 }
 0x14a   :  { %v427_v29 = vpop.f32.mrf.mxu0  ;;  %v1997_v30 = vpop.f32.mrf.mxu1 }
 0x14b   :  { %v2025_v2 = vadd.f32 %v1929_v20, %v427_v29 }
 0x14c   :  { %v1600_v34 = vpop.f32.mrf.mxu0  ;;  %v1652_v38 = vpop.f32.mrf.mxu1 }
 0x14d   :  { %v568_v13 = vadd.f32 %v567_v1, %v2025_v2 }
 0x14e   :  { %v432_v45 = vpop.f32.mrf.mxu0  ;;  %v2007_v48 = vpop.f32.mrf.mxu1 }
 0x14f   :  { %v2031_v22 = vadd.f32 %v1929_v20, %v432_v45 }
 0x150   :  { %v1603_v50 = vpop.f32.mrf.mxu0  ;;  %v1655_v54 = vpop.f32.mrf.mxu1 }
 0x151   :  { %v569_v29 = vadd.f32 %v568_v13, %v2031_v22  ;;  %v2056_v13 = vadd.f32 %v1929_v20, %v1900_v35 }
 0x152   :  { %v435_v61 = vpop.f32.mrf.mxu0  ;;  %v2017_v58 = vpop.f32.mrf.mxu1 }
 0x153   :  { %v2035_v34 = vadd.f32 %v1929_v20, %v435_v61  ;;  %2695 = vst [vmem:[#allocation11_spill] sm:$0xff] %v2056_v13 }
 0x154   :  { %v1604_v8 = vpop.f32.mrf.mxu0  ;;  %v1656_v9 = vpop.f32.mrf.mxu1 }
 0x155   :  { %v570_v32 = vadd.f32 %v569_v29, %v2035_v34 }
 0x156   :  { %v440_v6 = vpop.f32.mrf.mxu0  ;;  %v2027_v21 = vpop.f32.mrf.mxu1 }
 0x157   :  { %v2039_v24 = vadd.f32 %v1929_v20, %v440_v6 }
 0x158   :  { %v1607_v10 = vpop.f32.mrf.mxu0  ;;  %v1659_v14 = vpop.f32.mrf.mxu1 }
 0x159   :  { %v571_v8 = vadd.f32 %v570_v32, %v2039_v24  ;;  %v468_v32 = vadd.f32 %v1929_v20, %v1906_v47  ;;  %v489_v47 = vadd.f32 %v1929_v20, %v1916_v3  ;;  %v508_v3 = vadd.f32 %v1929_v20, %v1934_v25 }
 0x15a   :  { %v443_v38 = vpop.f32.mrf.mxu0  ;;  %v547_v18 = vpop.f32.mrf.mxu1  ;;  %v529_v25 = vadd.f32 %v1929_v20, %v1987_v16 }
 0x15b   :  { %v2043_v45 = vadd.f32 %v1929_v20, %v443_v38  ;;  %v460_v18 = vadd.f32 %v1929_v20, %v1902_v39  ;;  %v481_v39 = vadd.f32 %v1929_v20, %v1912_v59  ;;  %v500_v59 = vadd.f32 %v1929_v20, %v1922_v15 }
 0x15c   :  { %v1608_v50 = vpop.f32.mrf.mxu0  ;;  %v1660_v54 = vpop.f32.mrf.mxu1  ;;  %v521_v15 = vadd.f32 %v1929_v20, %v1967_v56  ;;  %v540_v56 = vadd.f32 %v1929_v20, %v2017_v58 }
 0x15d   :  { %v572_v53 = vadd.f32 %v571_v8, %v2043_v45  ;;  %v465_v50 = vadd.f32 %v1929_v20, %v1904_v43  ;;  %v473_v8 = vadd.f32 %v1929_v20, %v1908_v51  ;;  %v484_v43 = vadd.f32 %v1929_v20, %v1914_v63 }
 0x15e   :  { %v448_v42 = vpop.f32.mrf.mxu0  ;;  %v492_v51 = vadd.f32 %v1929_v20, %v1918_v7  ;;  %v505_v63 = vadd.f32 %v1929_v20, %v1924_v19  ;;  %v513_v7 = vadd.f32 %v1929_v20, %v1947_v33  ;;  %v524_v19 = vadd.f32 %v1929_v20, %v1977_v4 }
 0x15f   :  { %v2047_v61 = vadd.f32 %v1929_v20, %v448_v42  ;;  %v532_v33 = vadd.f32 %v1929_v20, %v1997_v30 }
 0x160   :  { %v1611_v9 = vpop.f32.mrf.mxu0 }
 0x161   :  { %v573_v6 = vadd.f32 %v572_v53, %v2047_v61  ;;  %v476_v9 = vadd.f32 %v1929_v20, %v1910_v55  ;;  %v497_v55 = vadd.f32 %v1929_v20, %v1920_v11  ;;  %v516_v11 = vadd.f32 %v1929_v20, %v1957_v44 }
 0x162   :  { %v451_v1 = vpop.f32.mrf.mxu0  ;;  %v537_v44 = vadd.f32 %v1929_v20, %v2007_v48 }
 0x163   :  { %v2052_v10 = vadd.f32 %v1929_v20, %v451_v1 }
 0x164   :  { %v1612_v14 = vpop.f32.mrf.mxu0 }
 0x165   :  { %v574_v38 = vadd.f32 %v573_v6, %v2052_v10 }
 0x167   :  { %v575_v29 = vadd.f32 %v574_v38, %v2056_v13 }
 0x169   :  { %v576_v54 = vadd.f32 %v575_v29, %v460_v18 }
 0x16b   :  { %v577_v42 = vadd.f32 %v576_v54, %v465_v50 }
 0x16d   :  { %v578_v35 = vadd.f32 %v577_v42, %v468_v32 }
 0x16f   :  { %v579_v53 = vadd.f32 %v578_v35, %v473_v8 }
 0x171   :  { %v580_v1 = vadd.f32 %v579_v53, %v476_v9 }
 0x173   :  { %v581_v6 = vadd.f32 %v580_v1, %v481_v39 }
 0x175   :  { %v582_v14 = vadd.f32 %v581_v6, %v484_v43 }
 0x177   :  { %v583_v38 = vadd.f32 %v582_v14, %v489_v47 }
 0x179   :  { %v584_v29 = vadd.f32 %v583_v38, %v492_v51 }
 0x17b   :  { %v585_v54 = vadd.f32 %v584_v29, %v497_v55 }
 0x17d   :  { %v586_v42 = vadd.f32 %v585_v54, %v500_v59 }
 0x17f   :  { %v587_v35 = vadd.f32 %v586_v42, %v505_v63 }
 0x181   :  { %v588_v53 = vadd.f32 %v587_v35, %v508_v3  ;;  %v545_v35 = vadd.f32 %v1929_v20, %v2027_v21 }
 0x183   :  { %v589_v1 = vadd.f32 %v588_v53, %v513_v7 }
 0x185   :  { %v590_v6 = vadd.f32 %v589_v1, %v516_v11 }
 0x187   :  { %v591_v14 = vadd.f32 %v590_v6, %v521_v15 }
 0x189   :  { %v592_v38 = vadd.f32 %v591_v14, %v524_v19 }
 0x18b   :  { %v593_v29 = vadd.f32 %v592_v38, %v529_v25 }
 0x18d   :  { %v594_v54 = vadd.f32 %v593_v29, %v532_v33 }
 0x18f   :  { %v595_v42 = vadd.f32 %v594_v54, %v537_v44 }
 0x191   :  { %v596_v4 = vadd.f32 %v595_v42, %v540_v56 }
 0x193   :  { %v597_v53 = vadd.f32 %v596_v4, %v545_v35 }
 0x195   :  { %v598_v1 = vrot.slane %v597_v53, 4 }
 0x197   :  { %v599_v6 = vadd.f32 %v598_v1, %v597_v53 }
 0x199   :  { %v600_v16 = vrot.slane %v599_v6, 2 }
 0x19b   :  { %v601_v14 = vadd.f32 %v600_v16, %v599_v6 }
 0x19d   :  { %v602_v38 = vrot.slane %v601_v14, 1 }
 0x19f   :  { %v603_v13 = vadd.f32 %v602_v38, %v601_v14 }
 0x1a1   :  { %v2104_v30 = vmul.f32 0.0025510204, %v603_v13 }
 0x1a3   :  { %v2107_v29 = vsub.f32 %v460_v18, %v2104_v30  ;;  %v2110_v48 = vsub.f32 %v465_v50, %v2104_v30  ;;  %v2113_v58 = vsub.f32 %v468_v32, %v2104_v30  ;;  %v2116_v20 = vsub.f32 %v473_v8, %v2104_v30 }
 0x1a4   :  { %v2119_v21 = vsub.f32 %v476_v9, %v2104_v30  ;;  %v2122_v54 = vsub.f32 %v481_v39, %v2104_v30  ;;  %v2125_v13 = vsub.f32 %v484_v43, %v2104_v30  ;;  %v2128_v18 = vsub.f32 %v489_v47, %v2104_v30 }
 0x1a5   :  { %v2131_v50 = vsub.f32 %v492_v51, %v2104_v30  ;;  %v2134_v32 = vsub.f32 %v497_v55, %v2104_v30  ;;  %v2137_v8 = vsub.f32 %v500_v59, %v2104_v30  ;;  %v2140_v9 = vsub.f32 %v505_v63, %v2104_v30 }
 0x1a6   :  { %v2143_v39 = vsub.f32 %v508_v3, %v2104_v30  ;;  %v2146_v43 = vsub.f32 %v513_v7, %v2104_v30  ;;  %v2149_v47 = vsub.f32 %v516_v11, %v2104_v30  ;;  %v2152_v51 = vsub.f32 %v521_v15, %v2104_v30 }
 0x1a7   :  { %v2155_v55 = vsub.f32 %v524_v19, %v2104_v30  ;;  %v2158_v59 = vsub.f32 %v529_v25, %v2104_v30  ;;  %v2161_v63 = vsub.f32 %v532_v33, %v2104_v30  ;;  %v2164_v3 = vsub.f32 %v537_v44, %v2104_v30 }
 0x1a8   :  { %v2167_v7 = vsub.f32 %v540_v56, %v2104_v30  ;;  %v2170_v11 = vsub.f32 %v545_v35, %v2104_v30  ;;  %v2174_v15 = vsub.f32 %v1937_v26, %v2104_v30  ;;  %v2178_v19 = vsub.f32 %v1932_v23, %v2104_v30 }
 0x1a9   :  { %2696 = vst [vmem:[#allocation12_spill] sm:$0xff] %v2158_v59  ;;  %2697 = vst [vmem:[#allocation13_spill] sm:$0xff] %v2161_v63  ;;  %v2182_v25 = vsub.f32 %v1940_v27, %v2104_v30  ;;  %v2190_v42 = vsub.f32 %v1945_v31, %v2104_v30  ;;  %v2194_v26 = vsub.f32 %v1951_v37, %v2104_v30 }
 0x1aa   :  { %2698 = vst [vmem:[#allocation14_spill] sm:$0xff] %v2164_v3  ;;  %v655_v33 = vmul.f32 %v2174_v15, %v2174_v15  ;;  %v656_v44 = vmul.f32 %v2178_v19, %v2178_v19  ;;  %v2200_v27 = vsub.f32 %v1955_v41, %v2104_v30  ;;  %v2206_v31 = vsub.f32 %v1961_v46, %v2104_v30 }
 0x1ab   :  { %v657_v23 = vmul.f32 %v2182_v25, %v2182_v25  ;;  %v658_v35 = vmul.f32 %v2190_v42, %v2190_v42  ;;  %v659_v37 = vmul.f32 %v2194_v26, %v2194_v26  ;;  %v2212_v1 = vsub.f32 %v1965_v52, %v2104_v30 }
 0x1ac   :  { %v704_v56 = vadd.f32 %v656_v44, %v655_v33  ;;  %v660_v41 = vmul.f32 %v2200_v27, %v2200_v27  ;;  %v2218_v16 = vsub.f32 %v1971_v57, %v2104_v30  ;;  %v661_v46 = vmul.f32 %v2206_v31, %v2206_v31 }
 0x1ad   :  { %v2224_v38 = vsub.f32 %v1975_v0, %v2104_v30  ;;  %v662_v52 = vmul.f32 %v2212_v1, %v2212_v1  ;;  %v2230_v44 = vsub.f32 %v1981_v5, %v2104_v30 }
 0x1ae   :  { %v705_v4 = vadd.f32 %v704_v56, %v657_v23  ;;  %v663_v57 = vmul.f32 %v2218_v16, %v2218_v16  ;;  %v2236_v56 = vsub.f32 %v1985_v12, %v2104_v30 }
 0x1af   :  { %v664_v0 = vmul.f32 %v2224_v38, %v2224_v38  ;;  %v665_v5 = vmul.f32 %v2230_v44, %v2230_v44 }
 0x1b0   :  { %v706_v53 = vadd.f32 %v705_v4, %v658_v35  ;;  %v2242_v4 = vsub.f32 %v1991_v17, %v2104_v30  ;;  %v666_v12 = vmul.f32 %v2236_v56, %v2236_v56 }
 0x1b2   :  { %v707_v6 = vadd.f32 %v706_v53, %v659_v37  ;;  %v2248_v53 = vsub.f32 %v1995_v28, %v2104_v30  ;;  %v667_v17 = vmul.f32 %v2242_v4, %v2242_v4 }
 0x1b4   :  { %v708_v14 = vadd.f32 %v707_v6, %v660_v41  ;;  %v2254_v6 = vsub.f32 %v2001_v36, %v2104_v30  ;;  %v668_v28 = vmul.f32 %v2248_v53, %v2248_v53 }
 0x1b6   :  { %v709_v33 = vadd.f32 %v708_v14, %v661_v46  ;;  %v2260_v14 = vsub.f32 %v2005_v40, %v2104_v30  ;;  %v669_v36 = vmul.f32 %v2254_v6, %v2254_v6 }
 0x1b8   :  { %v710_v23 = vadd.f32 %v709_v33, %v662_v52  ;;  %v2266_v33 = vsub.f32 %v2011_v49, %v2104_v30  ;;  %v670_v40 = vmul.f32 %v2260_v14, %v2260_v14 }
 0x1ba   :  { %v711_v35 = vadd.f32 %v710_v23, %v663_v57  ;;  %v2272_v23 = vsub.f32 %v2015_v60, %v2104_v30  ;;  %v671_v49 = vmul.f32 %v2266_v33, %v2266_v33 }
 0x1bc   :  { %v712_v37 = vadd.f32 %v711_v35, %v664_v0  ;;  %v2278_v35 = vsub.f32 %v2021_v62, %v2104_v30  ;;  %v672_v60 = vmul.f32 %v2272_v23, %v2272_v23 }
 0x1be   :  { %v713_v41 = vadd.f32 %v712_v37, %v665_v5  ;;  %v2284_v37 = vsub.f32 %v2025_v2, %v2104_v30  ;;  %v673_v62 = vmul.f32 %v2278_v35, %v2278_v35 }
 0x1c0   :  { %v714_v46 = vadd.f32 %v713_v41, %v666_v12  ;;  %v2290_v41 = vsub.f32 %v2031_v22, %v2104_v30  ;;  %v674_v2 = vmul.f32 %v2284_v37, %v2284_v37 }
 0x1c2   :  { %v715_v52 = vadd.f32 %v714_v46, %v667_v17  ;;  %v2296_v46 = vsub.f32 %v2035_v34, %v2104_v30  ;;  %v675_v22 = vmul.f32 %v2290_v41, %v2290_v41 }
 0x1c4   :  { %v716_v57 = vadd.f32 %v715_v52, %v668_v28  ;;  %v2302_v52 = vsub.f32 %v2039_v24, %v2104_v30  ;;  %v676_v34 = vmul.f32 %v2296_v46, %v2296_v46 }
 0x1c6   :  { %v717_v0 = vadd.f32 %v716_v57, %v669_v36  ;;  %v2308_v57 = vsub.f32 %v2043_v45, %v2104_v30  ;;  %v677_v24 = vmul.f32 %v2302_v52, %v2302_v52 }
 0x1c8   :  { %v718_v5 = vadd.f32 %v717_v0, %v670_v40  ;;  %v2314_v0 = vsub.f32 %v2047_v61, %v2104_v30  ;;  %v678_v45 = vmul.f32 %v2308_v57, %v2308_v57 }
 0x1ca   :  { %v719_v12 = vadd.f32 %v718_v5, %v671_v49  ;;  %v2320_v5 = vsub.f32 %v2052_v10, %v2104_v30  ;;  %v679_v61 = vmul.f32 %v2314_v0, %v2314_v0 }
 0x1cc   :  { %v720_v17 = vadd.f32 %v719_v12, %v672_v60  ;;  %v2699_v12 = vld [vmem:[#allocation11_spill] sm:$0xff] }
 0x1ce   :  { %v721_v28 = vadd.f32 %v720_v17, %v673_v62  ;;  %v2326_v62 = vsub.f32 %v2699_v12, %v2104_v30  ;;  %v683_v30 = vmul.f32 %v2110_v48, %v2110_v48  ;;  %v686_v12 = vmul.f32 %v2119_v21, %v2119_v21 }
 0x1d0   :  { %v722_v36 = vadd.f32 %v721_v28, %v674_v2  ;;  %v680_v2 = vmul.f32 %v2320_v5, %v2320_v5  ;;  %v681_v10 = vmul.f32 %v2326_v62, %v2326_v62 }
 0x1d2   :  { %v723_v40 = vadd.f32 %v722_v36, %v675_v22  ;;  %v682_v36 = vmul.f32 %v2107_v29, %v2107_v29 }
 0x1d4   :  { %v724_v49 = vadd.f32 %v723_v40, %v676_v34 }
 0x1d6   :  { %v725_v60 = vadd.f32 %v724_v49, %v677_v24  ;;  %v684_v24 = vmul.f32 %v2113_v58, %v2113_v58 }
 0x1d8   :  { %v726_v17 = vadd.f32 %v725_v60, %v678_v45  ;;  %v685_v45 = vmul.f32 %v2116_v20, %v2116_v20 }
 0x1da   :  { %v727_v28 = vadd.f32 %v726_v17, %v679_v61  ;;  %v687_v17 = vmul.f32 %v2122_v54, %v2122_v54 }
 0x1dc   :  { %v728_v22 = vadd.f32 %v727_v28, %v680_v2  ;;  %v688_v28 = vmul.f32 %v2125_v13, %v2125_v13 }
 0x1de   :  { %v729_v34 = vadd.f32 %v728_v22, %v681_v10  ;;  %v689_v22 = vmul.f32 %v2128_v18, %v2128_v18 }
 0x1e0   :  { %v730_v40 = vadd.f32 %v729_v34, %v682_v36  ;;  %v690_v34 = vmul.f32 %v2131_v50, %v2131_v50 }
 0x1e2   :  { %v731_v49 = vadd.f32 %v730_v40, %v683_v30  ;;  %v691_v40 = vmul.f32 %v2134_v32, %v2134_v32 }
 0x1e4   :  { %v732_v60 = vadd.f32 %v731_v49, %v684_v24  ;;  %v692_v49 = vmul.f32 %v2137_v8, %v2137_v8 }
 0x1e6   :  { %v733_v61 = vadd.f32 %v732_v60, %v685_v45  ;;  %v693_v60 = vmul.f32 %v2140_v9, %v2140_v9 }
 0x1e8   :  { %v734_v2 = vadd.f32 %v733_v61, %v686_v12  ;;  %v694_v61 = vmul.f32 %v2143_v39, %v2143_v39 }
 0x1ea   :  { %v735_v10 = vadd.f32 %v734_v2, %v687_v17  ;;  %v695_v2 = vmul.f32 %v2146_v43, %v2146_v43 }
 0x1ec   :  { %v736_v36 = vadd.f32 %v735_v10, %v688_v28  ;;  %v696_v10 = vmul.f32 %v2149_v47, %v2149_v47 }
 0x1ee   :  { %v737_v30 = vadd.f32 %v736_v36, %v689_v22  ;;  %v697_v36 = vmul.f32 %v2152_v51, %v2152_v51 }
 0x1f0   :  { %v738_v24 = vadd.f32 %v737_v30, %v690_v34  ;;  %v698_v30 = vmul.f32 %v2155_v55, %v2155_v55 }
 0x1f2   :  { %v739_v45 = vadd.f32 %v738_v24, %v691_v40  ;;  %v699_v24 = vmul.f32 %v2158_v59, %v2158_v59 }
 0x1f4   :  { %v740_v12 = vadd.f32 %v739_v45, %v692_v49  ;;  %v700_v45 = vmul.f32 %v2161_v63, %v2161_v63 }
 0x1f6   :  { %v741_v17 = vadd.f32 %v740_v12, %v693_v60  ;;  %v701_v12 = vmul.f32 %v2164_v3, %v2164_v3 }
 0x1f8   :  { %v742_v28 = vadd.f32 %v741_v17, %v694_v61  ;;  %v702_v17 = vmul.f32 %v2167_v7, %v2167_v7 }
 0x1fa   :  { %v743_v22 = vadd.f32 %v742_v28, %v695_v2  ;;  %v703_v28 = vmul.f32 %v2170_v11, %v2170_v11 }
 0x1fc   :  { %v744_v34 = vadd.f32 %v743_v22, %v696_v10 }
 0x1fe   :  { %v745_v40 = vadd.f32 %v744_v34, %v697_v36 }
 0x200   :  { %v746_v49 = vadd.f32 %v745_v40, %v698_v30 }
 0x202   :  { %v747_v60 = vadd.f32 %v746_v49, %v699_v24 }
 0x204   :  { %v748_v61 = vadd.f32 %v747_v60, %v700_v45  ;;  %v2381_v45 = vld [vmem:[%s2688_s3] ss:$0 sm:$0xff]  ;;  %s1791_s3 = smov [#allocation7]  }
 0x206   :  { %v749_v2 = vadd.f32 %v748_v61, %v701_v12 }
 0x208   :  { %v750_v10 = vadd.f32 %v749_v2, %v702_v17 }
 0x20a   :  { %v751_v22 = vadd.f32 %v750_v10, %v703_v28 }
 0x20c   :  { %v752_v36 = vrot.slane %v751_v22, 4 }
 0x20e   :  { %v753_v34 = vadd.f32 %v752_v36, %v751_v22 }
 0x210   :  { %v754_v30 = vrot.slane %v753_v34, 2 }
 0x212   :  { %v755_v40 = vadd.f32 %v754_v30, %v753_v34 }
 0x214   :  { %v756_v59 = vrot.slane %v755_v40, 1 }
 0x216   :  { %v757_v63 = vadd.f32 %v756_v59, %v755_v40  ;;  %v2390_v59 = vld [vmem:[%s2689_s4] ss:$0 sm:$0xff]  ;;  %s1222_s4 = sshll.u32 %s1791_s3, 4  ;;  %s1223_s4 = int_to_ptr.vmem [resolvable:$true] %s1222_s4 }
 0x217   :  { %s1759_s8 = scalar_lea.vmem %s1223_s4, 3136  ;;  %p1764_p11 = scmp.lt.s32.totalorder %s1223_s4, %s1223_s4 }
 0x218   :  { %v758_v24 = vmul.f32 0.0025510204, %v757_v63  ;;  %p1760_p10 = scmp.ne.s32.totalorder %s1223_s4, %s1759_s8  ;;  %p1765_p12 = scmp.lt.s32.totalorder %s1759_s8, %s1759_s8 }
 0x21a   :  { %v759_v49 = vadd.f32 1e-05, %v758_v24  ;;  %p1766_p13 = por %p1765_p12, %p1764_p11 }
 0x21c   :  { %1717 = vrsqrt.f32 %v759_v49  ;;  %p1767_p0 = pnand %p1766_p13, %p1760_p10 }
 0x229   :  { %v1718_v3 = vpop.eup %1717 }
 0x22a   :  { %v809_v60 = vmul.f32 %v1718_v3, %v2170_v11  ;;  %v761_v12 = vmul.f32 %v1718_v3, %v2174_v15  ;;  %v762_v61 = vmul.f32 %v1718_v3, %v2178_v19  ;;  %v763_v17 = vmul.f32 %v1718_v3, %v2182_v25 }
 0x22b   :  { %v764_v63 = vmul.f32 %v1718_v3, %v2190_v42  ;;  %v765_v2 = vmul.f32 %v1718_v3, %v2194_v26  ;;  %v766_v28 = vmul.f32 %v1718_v3, %v2200_v27  ;;  %v767_v10 = vmul.f32 %v1718_v3, %v2206_v31 }
 0x22c   :  { %v865_v11 = vmul.f32 %v2381_v45, %v809_v60  ;;  %v768_v15 = vmul.f32 %v1718_v3, %v2212_v1  ;;  %v769_v19 = vmul.f32 %v1718_v3, %v2218_v16  ;;  %v770_v25 = vmul.f32 %v1718_v3, %v2224_v38  ;;  %v2701_v60 = vld [vmem:[#allocation13_spill] sm:$0xff] }
 0x22d   :  { %v771_v22 = vmul.f32 %v1718_v3, %v2230_v44  ;;  %v772_v36 = vmul.f32 %v1718_v3, %v2236_v56  ;;  %v773_v42 = vmul.f32 %v1718_v3, %v2242_v4  ;;  %v774_v26 = vmul.f32 %v1718_v3, %v2248_v53 }
 0x22e   :  { %v921_v27 = vadd.f32 %v2390_v59, %v865_v11  ;;  %v775_v31 = vmul.f32 %v1718_v3, %v2254_v6  ;;  %v776_v34 = vmul.f32 %v1718_v3, %v2260_v14  ;;  %v777_v1 = vmul.f32 %v1718_v3, %v2266_v33  ;;  %v2702_v11 = vld [vmem:[#allocation14_spill] sm:$0xff] }
 0x22f   :  { %v778_v16 = vmul.f32 %v1718_v3, %v2272_v23  ;;  %v779_v38 = vmul.f32 %v1718_v3, %v2278_v35  ;;  %v780_v44 = vmul.f32 %v1718_v3, %v2284_v37  ;;  %v781_v56 = vmul.f32 %v1718_v3, %v2290_v41 }
 0x230   :  { %v970_v30 = vmax.f32 %v921_v27, 0.0  ;;  %v782_v4 = vmul.f32 %v1718_v3, %v2296_v46  ;;  %v783_v53 = vmul.f32 %v1718_v3, %v2302_v52  ;;  %v784_v40 = vmul.f32 %v1718_v3, %v2308_v57 }
 0x231   :  { %v785_v6 = vmul.f32 %v1718_v3, %v2314_v0  ;;  %v786_v14 = vmul.f32 %v1718_v3, %v2320_v5  ;;  %v787_v33 = vmul.f32 %v1718_v3, %v2326_v62  ;;  %v788_v23 = vmul.f32 %v1718_v3, %v2107_v29 }
 0x232   :  { %v1368_v35 = vpack.c.bf16 %v970_v30, %v970_v30  ;;  %v789_v37 = vmul.f32 %v1718_v3, %v2110_v48  ;;  %v790_v41 = vmul.f32 %v1718_v3, %v2113_v58  ;;  %v791_v24 = vmul.f32 %v1718_v3, %v2116_v20 }
 0x233   :  { %v792_v46 = vmul.f32 %v1718_v3, %v2119_v21  ;;  %v793_v52 = vmul.f32 %v1718_v3, %v2122_v54  ;;  %v794_v57 = vmul.f32 %v1718_v3, %v2125_v13  ;;  %v795_v0 = vmul.f32 %v1718_v3, %v2128_v18  ;;  %v2700_v18 = vld [vmem:[#allocation12_spill] sm:$0xff] }
 0x234   :  { %1216 = vst [vmem:[#allocation7 + $0xc0] sm:$0xf] %v1368_v35  ;;  %v796_v5 = vmul.f32 %v1718_v3, %v2131_v50  ;;  %v797_v29 = vmul.f32 %v1718_v3, %v2134_v32  ;;  %v798_v62 = vmul.f32 %v1718_v3, %v2137_v8  ;;  %v799_v48 = vmul.f32 %v1718_v3, %v2140_v9 }
 0x235   :  { %v800_v58 = vmul.f32 %v1718_v3, %v2143_v39  ;;  %v801_v20 = vmul.f32 %v1718_v3, %v2146_v43  ;;  %v802_v21 = vmul.f32 %v1718_v3, %v2149_v47  ;;  %v803_v54 = vmul.f32 %v1718_v3, %v2152_v51 }
 0x236   :  { %v804_v13 = vmul.f32 %v1718_v3, %v2155_v55  ;;  %v805_v49 = vmul.f32 %v1718_v3, %v2700_v18  ;;  %v806_v50 = vmul.f32 %v1718_v3, %v2701_v60  ;;  %v807_v32 = vmul.f32 %v1718_v3, %v2702_v11 }
 0x237   :  { %v808_v8 = vmul.f32 %v1718_v3, %v2167_v7  ;;  %v817_v9 = vmul.f32 %v2381_v45, %v761_v12  ;;  %v818_v39 = vmul.f32 %v2381_v45, %v762_v61  ;;  %v819_v43 = vmul.f32 %v2381_v45, %v763_v17 }
 0x238   :  { %v820_v47 = vmul.f32 %v2381_v45, %v764_v63  ;;  %v821_v51 = vmul.f32 %v2381_v45, %v765_v2  ;;  %v822_v55 = vmul.f32 %v2381_v45, %v766_v28  ;;  %v823_v27 = vmul.f32 %v2381_v45, %v767_v10 }
 0x239   :  { %v824_v30 = vmul.f32 %v2381_v45, %v768_v15  ;;  %v825_v35 = vmul.f32 %v2381_v45, %v769_v19  ;;  %v826_v3 = vmul.f32 %v2381_v45, %v770_v25  ;;  %v827_v7 = vmul.f32 %v2381_v45, %v771_v22 }
 0x23a   :  { %v828_v12 = vmul.f32 %v2381_v45, %v772_v36  ;;  %v829_v61 = vmul.f32 %v2381_v45, %v773_v42  ;;  %v830_v17 = vmul.f32 %v2381_v45, %v774_v26  ;;  %v831_v63 = vmul.f32 %v2381_v45, %v775_v31 }
 0x23b   :  { %v832_v2 = vmul.f32 %v2381_v45, %v776_v34  ;;  %v833_v28 = vmul.f32 %v2381_v45, %v777_v1  ;;  %v834_v10 = vmul.f32 %v2381_v45, %v778_v16  ;;  %v835_v15 = vmul.f32 %v2381_v45, %v779_v38 }
 0x23c   :  { %v836_v19 = vmul.f32 %v2381_v45, %v780_v44  ;;  %v837_v25 = vmul.f32 %v2381_v45, %v781_v56  ;;  %v838_v22 = vmul.f32 %v2381_v45, %v782_v4  ;;  %v839_v36 = vmul.f32 %v2381_v45, %v783_v53 }
 0x23d   :  { %v840_v42 = vmul.f32 %v2381_v45, %v784_v40  ;;  %v841_v26 = vmul.f32 %v2381_v45, %v785_v6  ;;  %v842_v31 = vmul.f32 %v2381_v45, %v786_v14  ;;  %v843_v34 = vmul.f32 %v2381_v45, %v787_v33 }
 0x23e   :  { %v844_v1 = vmul.f32 %v2381_v45, %v788_v23  ;;  %v845_v16 = vmul.f32 %v2381_v45, %v789_v37  ;;  %v846_v38 = vmul.f32 %v2381_v45, %v790_v41  ;;  %v847_v44 = vmul.f32 %v2381_v45, %v791_v24 }
 0x23f   :  { %v848_v56 = vmul.f32 %v2381_v45, %v792_v46  ;;  %v849_v4 = vmul.f32 %v2381_v45, %v793_v52  ;;  %v850_v53 = vmul.f32 %v2381_v45, %v794_v57  ;;  %v851_v40 = vmul.f32 %v2381_v45, %v795_v0 }
 0x240   :  { %v852_v6 = vmul.f32 %v2381_v45, %v796_v5  ;;  %v853_v14 = vmul.f32 %v2381_v45, %v797_v29  ;;  %v854_v33 = vmul.f32 %v2381_v45, %v798_v62  ;;  %v855_v23 = vmul.f32 %v2381_v45, %v799_v48 }
 0x241   :  { %v856_v37 = vmul.f32 %v2381_v45, %v800_v58  ;;  %v857_v41 = vmul.f32 %v2381_v45, %v801_v20  ;;  %v858_v24 = vmul.f32 %v2381_v45, %v802_v21  ;;  %v859_v46 = vmul.f32 %v2381_v45, %v803_v54 }
 0x242   :  { %v860_v52 = vmul.f32 %v2381_v45, %v804_v13  ;;  %v861_v57 = vmul.f32 %v2381_v45, %v805_v49  ;;  %v862_v0 = vmul.f32 %v2381_v45, %v806_v50  ;;  %v863_v5 = vmul.f32 %v2381_v45, %v807_v32 }
 0x243   :  { %v864_v29 = vmul.f32 %v2381_v45, %v808_v8  ;;  %v2488_v62 = vadd.f32 %v2390_v59, %v817_v9  ;;  %v2491_v48 = vadd.f32 %v2390_v59, %v818_v39  ;;  %v2494_v58 = vadd.f32 %v2390_v59, %v819_v43 }
 0x244   :  { %v2497_v20 = vadd.f32 %v2390_v59, %v820_v47  ;;  %v2500_v21 = vadd.f32 %v2390_v59, %v821_v51  ;;  %v2503_v54 = vadd.f32 %v2390_v59, %v822_v55  ;;  %v2506_v45 = vadd.f32 %v2390_v59, %v823_v27 }
 0x245   :  { %v2509_v13 = vadd.f32 %v2390_v59, %v824_v30  ;;  %v2512_v18 = vadd.f32 %v2390_v59, %v825_v35  ;;  %v2515_v49 = vadd.f32 %v2390_v59, %v826_v3  ;;  %v2518_v60 = vadd.f32 %v2390_v59, %v827_v7 }
 0x246   :  { %v2521_v50 = vadd.f32 %v2390_v59, %v828_v12  ;;  %v2524_v11 = vadd.f32 %v2390_v59, %v829_v61  ;;  %v2527_v32 = vadd.f32 %v2390_v59, %v830_v17  ;;  %v2530_v8 = vadd.f32 %v2390_v59, %v831_v63 }
 0x247   :  { %v2533_v9 = vadd.f32 %v2390_v59, %v832_v2  ;;  %v2536_v39 = vadd.f32 %v2390_v59, %v833_v28  ;;  %v2539_v43 = vadd.f32 %v2390_v59, %v834_v10  ;;  %v2542_v47 = vadd.f32 %v2390_v59, %v835_v15 }
 0x248   :  { %v2545_v51 = vadd.f32 %v2390_v59, %v836_v19  ;;  %v2548_v55 = vadd.f32 %v2390_v59, %v837_v25  ;;  %v2551_v27 = vadd.f32 %v2390_v59, %v838_v22  ;;  %v2554_v30 = vadd.f32 %v2390_v59, %v839_v36 }
 0x249   :  { %v2557_v35 = vadd.f32 %v2390_v59, %v840_v42  ;;  %v2560_v3 = vadd.f32 %v2390_v59, %v841_v26  ;;  %v2563_v7 = vadd.f32 %v2390_v59, %v842_v31  ;;  %v2566_v12 = vadd.f32 %v2390_v59, %v843_v34 }
 0x24a   :  { %v2569_v61 = vadd.f32 %v2390_v59, %v844_v1  ;;  %v2572_v17 = vadd.f32 %v2390_v59, %v845_v16  ;;  %v2575_v63 = vadd.f32 %v2390_v59, %v846_v38  ;;  %v2578_v2 = vadd.f32 %v2390_v59, %v847_v44 }
 0x24b   :  { %v2581_v28 = vadd.f32 %v2390_v59, %v848_v56  ;;  %v2584_v10 = vadd.f32 %v2390_v59, %v849_v4  ;;  %v2587_v15 = vadd.f32 %v2390_v59, %v850_v53  ;;  %v2590_v19 = vadd.f32 %v2390_v59, %v851_v40 }
 0x24c   :  { %v2593_v25 = vadd.f32 %v2390_v59, %v852_v6  ;;  %v2596_v22 = vadd.f32 %v2390_v59, %v853_v14  ;;  %v2599_v36 = vadd.f32 %v2390_v59, %v854_v33  ;;  %v2602_v42 = vadd.f32 %v2390_v59, %v855_v23 }
 0x24d   :  { %v2605_v26 = vadd.f32 %v2390_v59, %v856_v37  ;;  %v2608_v31 = vadd.f32 %v2390_v59, %v857_v41  ;;  %v2611_v34 = vadd.f32 %v2390_v59, %v858_v24  ;;  %v2614_v1 = vadd.f32 %v2390_v59, %v859_v46 }
 0x24e   :  { %v2617_v16 = vadd.f32 %v2390_v59, %v860_v52  ;;  %v2620_v38 = vadd.f32 %v2390_v59, %v861_v57  ;;  %v2623_v44 = vadd.f32 %v2390_v59, %v862_v0  ;;  %v2626_v56 = vadd.f32 %v2390_v59, %v863_v5 }
 0x24f   :  { %v2629_v4 = vadd.f32 %v2390_v59, %v864_v29  ;;  %v922_v53 = vmax.f32 %v2488_v62, 0.0  ;;  %v923_v40 = vmax.f32 %v2491_v48, 0.0  ;;  %v924_v6 = vmax.f32 %v2494_v58, 0.0 }
 0x250   :  { %v925_v14 = vmax.f32 %v2497_v20, 0.0  ;;  %v926_v33 = vmax.f32 %v2500_v21, 0.0  ;;  %v927_v23 = vmax.f32 %v2503_v54, 0.0  ;;  %v928_v37 = vmax.f32 %v2506_v45, 0.0 }
 0x251   :  { %v929_v41 = vmax.f32 %v2509_v13, 0.0  ;;  %v930_v24 = vmax.f32 %v2512_v18, 0.0  ;;  %v931_v59 = vmax.f32 %v2515_v49, 0.0  ;;  %v932_v46 = vmax.f32 %v2518_v60, 0.0 }
 0x252   :  { %v933_v52 = vmax.f32 %v2521_v50, 0.0  ;;  %v934_v57 = vmax.f32 %v2524_v11, 0.0  ;;  %v935_v0 = vmax.f32 %v2527_v32, 0.0  ;;  %v936_v5 = vmax.f32 %v2530_v8, 0.0 }
 0x253   :  { %v937_v29 = vmax.f32 %v2533_v9, 0.0  ;;  %v938_v62 = vmax.f32 %v2536_v39, 0.0  ;;  %v939_v48 = vmax.f32 %v2539_v43, 0.0  ;;  %v940_v58 = vmax.f32 %v2542_v47, 0.0 }
 0x254   :  { %v941_v20 = vmax.f32 %v2545_v51, 0.0  ;;  %v942_v21 = vmax.f32 %v2548_v55, 0.0  ;;  %v943_v54 = vmax.f32 %v2551_v27, 0.0  ;;  %v944_v45 = vmax.f32 %v2554_v30, 0.0 }
 0x255   :  { %v945_v13 = vmax.f32 %v2557_v35, 0.0  ;;  %v946_v18 = vmax.f32 %v2560_v3, 0.0  ;;  %v947_v49 = vmax.f32 %v2563_v7, 0.0  ;;  %v948_v60 = vmax.f32 %v2566_v12, 0.0 }
 0x256   :  { %v949_v50 = vmax.f32 %v2569_v61, 0.0  ;;  %v950_v11 = vmax.f32 %v2572_v17, 0.0  ;;  %v951_v32 = vmax.f32 %v2575_v63, 0.0  ;;  %v952_v8 = vmax.f32 %v2578_v2, 0.0 }
 0x257   :  { %v953_v9 = vmax.f32 %v2581_v28, 0.0  ;;  %v954_v39 = vmax.f32 %v2584_v10, 0.0  ;;  %v955_v43 = vmax.f32 %v2587_v15, 0.0  ;;  %v956_v47 = vmax.f32 %v2590_v19, 0.0 }
 0x258   :  { %v957_v51 = vmax.f32 %v2593_v25, 0.0  ;;  %v958_v55 = vmax.f32 %v2596_v22, 0.0  ;;  %v959_v27 = vmax.f32 %v2599_v36, 0.0  ;;  %v960_v30 = vmax.f32 %v2602_v42, 0.0 }
 0x259   :  { %v961_v35 = vmax.f32 %v2605_v26, 0.0  ;;  %v962_v3 = vmax.f32 %v2608_v31, 0.0  ;;  %v963_v7 = vmax.f32 %v2611_v34, 0.0  ;;  %v964_v12 = vmax.f32 %v2614_v1, 0.0 }
 0x25a   :  { %v965_v61 = vmax.f32 %v2617_v16, 0.0  ;;  %v966_v17 = vmax.f32 %v2620_v38, 0.0  ;;  %v967_v63 = vmax.f32 %v2623_v44, 0.0  ;;  %v968_v2 = vmax.f32 %v2626_v56, 0.0 }
 0x25b   :  { %v969_v28 = vmax.f32 %v2629_v4, 0.0  ;;  %v1372_v10 = vpack.c.bf16 %v923_v40, %v922_v53  ;;  %v1377_v15 = vpack.c.bf16 %v925_v14, %v924_v6  ;;  %v1382_v19 = vpack.c.bf16 %v927_v23, %v926_v33 }
 0x25c   :  { %v1387_v25 = vpack.c.bf16 %v929_v41, %v928_v37  ;;  %v1392_v22 = vpack.c.bf16 %v931_v59, %v930_v24  ;;  %v1397_v36 = vpack.c.bf16 %v933_v52, %v932_v46  ;;  %v1402_v42 = vpack.c.bf16 %v935_v0, %v934_v57 }
 0x25d   :  { %1373 = vst [vmem:[#allocation7] sm:$0xff] %v1372_v10   ;;  %1489 = vst [vmem:[#allocation7 + $0x8] sm:$0xff] %v1377_v15   ;;  %v1407_v26 = vpack.c.bf16 %v937_v29, %v936_v5  ;;  %v1412_v31 = vpack.c.bf16 %v939_v48, %v938_v62  ;;  %v1417_v34 = vpack.c.bf16 %v941_v20, %v940_v58 }
 0x25e   :  { %1490 = vst [vmem:[#allocation7 + $0x10] sm:$0xff] %v1382_v19   ;;  %v1422_v1 = vpack.c.bf16 %v943_v54, %v942_v21  ;;  %1491 = vst [vmem:[#allocation7 + $0x18] sm:$0xff] %v1387_v25   ;;  %v1427_v16 = vpack.c.bf16 %v945_v13, %v944_v45  ;;  %v1432_v38 = vpack.c.bf16 %v947_v49, %v946_v18 }
 0x25f   :  { %1492 = vst [vmem:[#allocation7 + $0x20] sm:$0xff] %v1392_v22   ;;  %1493 = vst [vmem:[#allocation7 + $0x28] sm:$0xff] %v1397_v36   ;;  %v1437_v44 = vpack.c.bf16 %v949_v50, %v948_v60  ;;  %v1442_v56 = vpack.c.bf16 %v951_v32, %v950_v11  ;;  %v1447_v4 = vpack.c.bf16 %v953_v9, %v952_v8 }
 0x260   :  { %1494 = vst [vmem:[#allocation7 + $0x30] sm:$0xff] %v1402_v42   ;;  %1495 = vst [vmem:[#allocation7 + $0x38] sm:$0xff] %v1407_v26   ;;  %v1452_v53 = vpack.c.bf16 %v955_v43, %v954_v39  ;;  %v1457_v40 = vpack.c.bf16 %v957_v51, %v956_v47  ;;  %v1462_v6 = vpack.c.bf16 %v959_v27, %v958_v55 }
 0x261   :  { %1496 = vst [vmem:[#allocation7 + $0x40] sm:$0xff] %v1412_v31   ;;  %1497 = vst [vmem:[#allocation7 + $0x48] sm:$0xff] %v1417_v34   ;;  %v1467_v14 = vpack.c.bf16 %v961_v35, %v960_v30  ;;  %v1472_v33 = vpack.c.bf16 %v963_v7, %v962_v3  ;;  %v1477_v23 = vpack.c.bf16 %v965_v61, %v964_v12 }
 0x262   :  { %1498 = vst [vmem:[#allocation7 + $0x50] sm:$0xff] %v1422_v1   ;;  %1499 = vst [vmem:[#allocation7 + $0x58] sm:$0xff] %v1427_v16   ;;  %v1482_v37 = vpack.c.bf16 %v967_v63, %v966_v17  ;;  %v1487_v41 = vpack.c.bf16 %v969_v28, %v968_v2 }
 0x263   :  { %1500 = vst [vmem:[#allocation7 + $0x60] sm:$0xff] %v1432_v38   ;;  %1501 = vst [vmem:[#allocation7 + $0x68] sm:$0xff] %v1437_v44  }
 0x264   :  { %1502 = vst [vmem:[#allocation7 + $0x70] sm:$0xff] %v1442_v56   ;;  %1503 = vst [vmem:[#allocation7 + $0x78] sm:$0xff] %v1447_v4  }
 0x265   :  { %1504 = vst [vmem:[#allocation7 + $0x80] sm:$0xff] %v1452_v53   ;;  %1505 = vst [vmem:[#allocation7 + $0x88] sm:$0xff] %v1457_v40  }
 0x266   :  { %1506 = vst [vmem:[#allocation7 + $0x90] sm:$0xff] %v1462_v6   ;;  %1507 = vst [vmem:[#allocation7 + $0x98] sm:$0xff] %v1467_v14  }
 0x267   :  { %1508 = vst [vmem:[#allocation7 + $0xa0] sm:$0xff] %v1472_v33   ;;  %1509 = vst [vmem:[#allocation7 + $0xa8] sm:$0xff] %v1477_v23  }
 0x268   :  { %1510 = vst [vmem:[#allocation7 + $0xb0] sm:$0xff] %v1482_v37   ;;  %1511 = vst [vmem:[#allocation7 + $0xb8] sm:$0xff] %v1487_v41  }
 0x269   :  { %1770 = shalt.err (!%p1767_p0)
}
 0x26a   :  { %1228 = dma.vmem_to_hbm [thread:$0]  %s1223_s4, 3136, %s2690_s5, [#allocation4], %s1786_s21, %s1786_s21, %s1787_s22  }
 0x26b   :  { %1783 = dma.done.wait [#allocation4], 3136  }
 0x26c   :  { %1784 = vsyncadd [#allocation4], 4294964160 }
 0x26d   :  { %1232 = vsyncpa [#allocation3], 1 }
 0x26e   :  { %1233 = vsyncpa [#allocation6], 1 }
 0x26f   :  { %1234 = vsyncpa [#allocation4], 1 }

</bundles_post_ra>
